<compile_context>
chip_gen: v7x
topology: tpu7x:2x2x1
jax: 0.10.0
libtpu: 0.0.40
codegen_flags: <defaults>
</compile_context>

<pallas_src>
import jax
import jax.numpy as jnp
from jax.experimental import pallas as pl
from jax.experimental.pallas import tpu as pltpu


def _build_concat_dma_kernel(sizes):
    """Kernel: one HBM->HBM async copy per input into its output slice."""
    n_in = len(sizes)
    offsets = []
    off = 0
    for s in sizes:
        offsets.append(off)
        off += s

    def kernel(*refs):
        in_refs = refs[:n_in]          # HBM refs, shape (N, size_i)
        out_ref = refs[n_in]           # HBM ref,  shape (N, total)
        sem = refs[n_in + 1]           # DMA semaphores, one per input

        copies = []
        # Issue every DMA first so all inputs stream concurrently.
        for i in range(n_in):
            dst = out_ref.at[:, offsets[i]:offsets[i] + sizes[i]]
            cp = pltpu.make_async_copy(in_refs[i], dst, sem.at[i])
            cp.start()
            copies.append(cp)
        # Then wait for all of them.
        for cp in copies:
            cp.wait()

    return kernel


def concat_channels(xs):
    """Pallas equivalent of torch.cat(xs, dim=1) for a list of NCHW tensors."""
    assert len(xs) >= 1
    N, _, H, W = xs[0].shape
    dtype = xs[0].dtype
    for x in xs:
        assert x.shape[0] == N and x.shape[2] == H and x.shape[3] == W
        assert x.dtype == dtype

    channel_sizes = [int(x.shape[1]) for x in xs]
    c_total = sum(channel_sizes)

    # Lane-dense flatten: (N, C_i, H, W) -> (N, C_i*H*W).  Concat offsets are
    # C_i*H*W apart; for H*W % 128 == 0 they are 128-lane aligned.
    sizes = [c * H * W for c in channel_sizes]
    total = sum(sizes)
    flat = [x.reshape(N, s) for x, s in zip(xs, sizes)]

    kernel = _build_concat_dma_kernel(sizes)

    out_flat = pl.pallas_call(
        kernel,
        out_shape=jax.ShapeDtypeStruct((N, total), dtype),
        # Keep everything in HBM; the kernel moves data with explicit DMAs,
        # so there is no auto HBM<->VMEM staging and no VMEM footprint.
        in_specs=[pl.BlockSpec(memory_space=pl.ANY) for _ in xs],
        out_specs=pl.BlockSpec(memory_space=pl.ANY),
        scratch_shapes=[pltpu.SemaphoreType.DMA((len(xs),))],
        compiler_params=pltpu.CompilerParams(has_side_effects=True),
    )(*flat)

    return out_flat.reshape(N, c_total, H, W)


if __name__ == "__main__":
    key = jax.random.PRNGKey(0)
    k1, k2, k3 = jax.random.split(key, 3)

    # Small NCHW inputs with differing channel counts, mimicking skip-connection
    # feature maps that CustomNet_L concatenates along dim=1.
    x1 = jax.random.normal(k1, (2, 4, 16, 16), dtype=jnp.float32)
    x2 = jax.random.normal(k2, (2, 3, 16, 16), dtype=jnp.float32)
    x3 = jax.random.normal(k3, (2, 5, 16, 16), dtype=jnp.float32)

    out = concat_channels([x1, x2, x3])
    out = jax.block_until_ready(out)

    # Correctness check against the pure-JAX reference of torch.cat(..., dim=1).
    ref = jnp.concatenate([x1, x2, x3], axis=1)
    assert out.shape == ref.shape == (2, 12, 16, 16)
    assert out.dtype == ref.dtype
    assert bool(jnp.array_equal(out, ref))

    print("KERNEL_OK")
</pallas_src>

<mosaic_0001>
module attributes {stable_mosaic.version = 11 : i64} {
  func.func @kernel(%arg0: memref<2x1024xf32, #tpu.memory_space<any>>, %arg1: memref<2x768xf32, #tpu.memory_space<any>>, %arg2: memref<2x1280xf32, #tpu.memory_space<any>>, %arg3: memref<2x3072xf32, #tpu.memory_space<any>>, %arg4: memref<3x!tpu.dma_semaphore, #tpu.memory_space<semaphore_mem>>) attributes {dimension_semantics = [], scalar_prefetch = 0 : i64, scratch_operands = 1 : i64, tpu.core_type = #tpu.core_type<tc>} {
    %c0_i32 = arith.constant 0 : i32
    %c0_i32_0 = arith.constant 0 : i32
    %c0_i32_1 = arith.constant 0 : i32
    %0 = tpu.memref_slice %arg3[%c0_i32_0, %c0_i32_1] : memref<2x3072xf32, #tpu.memory_space<any>> -> memref<2x1024xf32, #tpu.memory_space<any>>
    %1 = tpu.memref_slice %arg4[%c0_i32] : memref<3x!tpu.dma_semaphore, #tpu.memory_space<semaphore_mem>> -> memref<1x!tpu.dma_semaphore, #tpu.memory_space<semaphore_mem>>
    %2 = tpu.memref_squeeze %1 : memref<1x!tpu.dma_semaphore, #tpu.memory_space<semaphore_mem>> -> memref<!tpu.dma_semaphore, #tpu.memory_space<semaphore_mem>>
    tpu.enqueue_dma source(%arg0 : memref<2x1024xf32, #tpu.memory_space<any>>) target(%0 : memref<2x1024xf32, #tpu.memory_space<any>>) target_semaphore(%2 : memref<!tpu.dma_semaphore, #tpu.memory_space<semaphore_mem>>)
    %c1_i32 = arith.constant 1 : i32
    %c0_i32_2 = arith.constant 0 : i32
    %c1024_i32 = arith.constant 1024 : i32
    %3 = tpu.memref_slice %arg3[%c0_i32_2, %c1024_i32] : memref<2x3072xf32, #tpu.memory_space<any>> -> memref<2x768xf32, #tpu.memory_space<any>>
    %4 = tpu.memref_slice %arg4[%c1_i32] : memref<3x!tpu.dma_semaphore, #tpu.memory_space<semaphore_mem>> -> memref<1x!tpu.dma_semaphore, #tpu.memory_space<semaphore_mem>>
    %5 = tpu.memref_squeeze %4 : memref<1x!tpu.dma_semaphore, #tpu.memory_space<semaphore_mem>> -> memref<!tpu.dma_semaphore, #tpu.memory_space<semaphore_mem>>
    tpu.enqueue_dma source(%arg1 : memref<2x768xf32, #tpu.memory_space<any>>) target(%3 : memref<2x768xf32, #tpu.memory_space<any>>) target_semaphore(%5 : memref<!tpu.dma_semaphore, #tpu.memory_space<semaphore_mem>>)
    %c2_i32 = arith.constant 2 : i32
    %c0_i32_3 = arith.constant 0 : i32
    %c1792_i32 = arith.constant 1792 : i32
    %6 = tpu.memref_slice %arg3[%c0_i32_3, %c1792_i32] : memref<2x3072xf32, #tpu.memory_space<any>> -> memref<2x1280xf32, #tpu.memory_space<any>>
    %7 = tpu.memref_slice %arg4[%c2_i32] : memref<3x!tpu.dma_semaphore, #tpu.memory_space<semaphore_mem>> -> memref<1x!tpu.dma_semaphore, #tpu.memory_space<semaphore_mem>>
    %8 = tpu.memref_squeeze %7 : memref<1x!tpu.dma_semaphore, #tpu.memory_space<semaphore_mem>> -> memref<!tpu.dma_semaphore, #tpu.memory_space<semaphore_mem>>
    tpu.enqueue_dma source(%arg2 : memref<2x1280xf32, #tpu.memory_space<any>>) target(%6 : memref<2x1280xf32, #tpu.memory_space<any>>) target_semaphore(%8 : memref<!tpu.dma_semaphore, #tpu.memory_space<semaphore_mem>>)
    %c0_i32_4 = arith.constant 0 : i32
    %c0_i32_5 = arith.constant 0 : i32
    %c0_i32_6 = arith.constant 0 : i32
    %9 = tpu.memref_slice %arg3[%c0_i32_5, %c0_i32_6] : memref<2x3072xf32, #tpu.memory_space<any>> -> memref<2x1024xf32, #tpu.memory_space<any>>
    %10 = tpu.memref_slice %arg4[%c0_i32_4] : memref<3x!tpu.dma_semaphore, #tpu.memory_space<semaphore_mem>> -> memref<1x!tpu.dma_semaphore, #tpu.memory_space<semaphore_mem>>
    %11 = tpu.memref_squeeze %10 : memref<1x!tpu.dma_semaphore, #tpu.memory_space<semaphore_mem>> -> memref<!tpu.dma_semaphore, #tpu.memory_space<semaphore_mem>>
    tpu.wait_dma2 semaphore(%11 : memref<!tpu.dma_semaphore, #tpu.memory_space<semaphore_mem>>) src(%arg0 : memref<2x1024xf32, #tpu.memory_space<any>>) dst(%9 : memref<2x1024xf32, #tpu.memory_space<any>>)
    %c1_i32_7 = arith.constant 1 : i32
    %c0_i32_8 = arith.constant 0 : i32
    %c1024_i32_9 = arith.constant 1024 : i32
    %12 = tpu.memref_slice %arg3[%c0_i32_8, %c1024_i32_9] : memref<2x3072xf32, #tpu.memory_space<any>> -> memref<2x768xf32, #tpu.memory_space<any>>
    %13 = tpu.memref_slice %arg4[%c1_i32_7] : memref<3x!tpu.dma_semaphore, #tpu.memory_space<semaphore_mem>> -> memref<1x!tpu.dma_semaphore, #tpu.memory_space<semaphore_mem>>
    %14 = tpu.memref_squeeze %13 : memref<1x!tpu.dma_semaphore, #tpu.memory_space<semaphore_mem>> -> memref<!tpu.dma_semaphore, #tpu.memory_space<semaphore_mem>>
    tpu.wait_dma2 semaphore(%14 : memref<!tpu.dma_semaphore, #tpu.memory_space<semaphore_mem>>) src(%arg1 : memref<2x768xf32, #tpu.memory_space<any>>) dst(%12 : memref<2x768xf32, #tpu.memory_space<any>>)
    %c2_i32_10 = arith.constant 2 : i32
    %c0_i32_11 = arith.constant 0 : i32
    %c1792_i32_12 = arith.constant 1792 : i32
    %15 = tpu.memref_slice %arg3[%c0_i32_11, %c1792_i32_12] : memref<2x3072xf32, #tpu.memory_space<any>> -> memref<2x1280xf32, #tpu.memory_space<any>>
    %16 = tpu.memref_slice %arg4[%c2_i32_10] : memref<3x!tpu.dma_semaphore, #tpu.memory_space<semaphore_mem>> -> memref<1x!tpu.dma_semaphore, #tpu.memory_space<semaphore_mem>>
    %17 = tpu.memref_squeeze %16 : memref<1x!tpu.dma_semaphore, #tpu.memory_space<semaphore_mem>> -> memref<!tpu.dma_semaphore, #tpu.memory_space<semaphore_mem>>
    tpu.wait_dma2 semaphore(%17 : memref<!tpu.dma_semaphore, #tpu.memory_space<semaphore_mem>>) src(%arg2 : memref<2x1280xf32, #tpu.memory_space<any>>) dst(%15 : memref<2x1280xf32, #tpu.memory_space<any>>)
    return
  }
}

</mosaic_0001>

<bundles_post_ra>
// kernel: tpu_custom_call.1
= control target key start
LH: loop header
LB: loop body
LE: loop exit
PB: predicated region body
PF: predicated region fallthrough
CT: control target
= control target key end

     0   :  { %s97_s15 = smov [#allocation2]   ;;  %s98_s16 = smov [#allocation3]   ;;  %s142_s0 = inlined_call_operand.hbm [shape: f32[2,1024], index: 0, kind: input, shape index: {}]   ;;  %s143_s3 = inlined_call_operand.hbm [shape: f32[2,3072], index: 3, kind: output, shape index: {}]   ;;  %s144_s1 = inlined_call_operand.hbm [shape: f32[2,768], index: 1, kind: input, shape index: {}]   ;;  %s145_s2 = inlined_call_operand.hbm [shape: f32[2,1280], index: 2, kind: input, shape index: {}]  }
   0x1   :  { %s21_s14 = scalar_lea.hbm %s143_s3, 256  ;;  %s99_s17 = smov 0  }
   0x2   :  { %20 = dma.general %s142_s0, 256, %s143_s3, %s97_s15, %s98_s16, [#allocation4], %s99_s17, 0  }
   0x3   :  { %s36_s24 = scalar_lea.hbm %s143_s3, 448  ;;  %s100_s25 = smov [#allocation2 + $0x1]  }
   0x4   :  { %s101_s26 = smov [#allocation5]   ;;  %s102_s29 = smov [#allocation2 + $0x2]  }
   0x5   :  { %35 = dma.general %s144_s1, 192, %s21_s14, %s100_s25, %s101_s26, [#allocation6], %s99_s17, 0  }
   0x6   :  { %s103_s30 = smov [#allocation7]  }
   0x7   :  { %50 = dma.general %s145_s2, 320, %s36_s24, %s102_s29, %s103_s30, [#allocation8], %s99_s17, 0  }
   0x8   :  { %91 = dma.done.wait [#allocation2], 256 }
   0x9   :  { %92 = vsyncadd [#allocation2], 4294967040 }
   0xa   :  { %93 = dma.done.wait [#allocation2 + $0x1], 192 }
   0xb   :  { %94 = vsyncadd [#allocation2 + $0x1], 4294967104 }
   0xc   :  { %95 = dma.done.wait [#allocation2 + $0x2], 320 }
   0xd   :  { %96 = vsyncadd [#allocation2 + $0x2], 4294966976 }
   0xe   :  { %61 = vsyncmov [#allocation2] }
  0x11   :  { %s62_s0 = vpop.sfrf %61 }
  0x12   :  { %p81_p0 = scmp.ne.s32.totalorder %s62_s0, 0 }
  0x14   :  { %66 = shalt.err (%p81_p0)  }
  0x15   :  { %68 = vsyncmov [#allocation2 + $0x1] }
  0x18   :  { %s69_s3 = vpop.sfrf %68 }
  0x19   :  { %p82_p1 = scmp.ne.s32.totalorder %s69_s3, 0 }
  0x1b   :  { %73 = shalt.err (%p82_p1)  }
  0x1c   :  { %75 = vsyncmov [#allocation2 + $0x2] }
  0x1f   :  { %s76_s1 = vpop.sfrf %75 }
  0x20   :  { %p83_p2 = scmp.ne.s32.totalorder %s76_s1, 0 }
  0x22   :  { %80 = shalt.err (%p83_p2)  }

</bundles_post_ra>
